<compile_context>
chip_gen: v7x
topology: tpu7x:2x2x1
jax: 0.10.0
libtpu: 0.0.40
codegen_flags: <defaults>
</compile_context>

<pallas_src>
import functools

import jax
import jax.numpy as jnp
from jax import lax
from jax.experimental import pallas as pl
from jax.experimental.pallas import tpu as pltpu


def _focal_loss_kernel(logits_ref, target_ref, picked_ref, *, gamma, n_valid, tile_n):
    i = pl.program_id(0)

    x = logits_ref[...].astype(jnp.float32)       # [T, C] f32 (upcast bf16 in-kernel)
    t = target_ref[...]                           # [T, 1] i32

    # Numerically-stable logsumexp along the class (lane) axis.
    m = jnp.max(x, axis=1, keepdims=True)         # [T, 1]
    z = x - m
    lse = jnp.log(jnp.sum(jnp.exp(z), axis=1, keepdims=True))   # [T, 1]

    # Gather x[i, target[i]] via one-hot mask (no dynamic gather on TPU),
    # BEFORE any transcendental work so exp/pow only run on [T, 1].
    col = jax.lax.broadcasted_iota(jnp.int32, x.shape, 1)        # [T, C]
    x_t = jnp.sum(jnp.where(col == t, x, 0.0), axis=1, keepdims=True)  # [T, 1]

    logpt_t = (x_t - m) - lse                     # [T, 1] = log_softmax at target
    pt_t = jnp.exp(logpt_t)                       # [T, 1]
    om = 1.0 - pt_t

    if isinstance(gamma, int) and not isinstance(gamma, bool):
        focal = lax.integer_pow(om, gamma)        # VALU multiplies, no EUP pow
    else:
        # float gamma: clamp so log() never sees <= 0 (pt can round above 1).
        focal = jnp.exp(jnp.float32(gamma) *
                        jnp.log(jnp.maximum(om, jnp.float32(1e-30))))

    mod = focal * logpt_t                         # [T, 1]

    # Mask padded rows of the ragged last tile.
    row = i * tile_n + jax.lax.broadcasted_iota(jnp.int32, (tile_n, 1), 0)
    picked_ref[...] = jnp.where(row < n_valid, mod, 0.0)


def _choose_tile_n(n, c, itemsize):
    """Multiple-of-8 row tile sized against a conservative VMEM budget."""
    budget = 4 * 1024 * 1024                      # per logits buffer (double-buffered)
    per_row = max(1, c) * max(int(itemsize), 4)   # account for in-kernel f32 upcast
    t = budget // per_row
    t = max(8, min(1024, t))
    t = (t // 8) * 8
    n_pad8 = ((n + 7) // 8) * 8
    return max(8, min(t, n_pad8))


def focal_loss(logits, target, gamma=2, tile_n=None):
    """logits: [N, C] float32/bfloat16; target: [N] int. Returns scalar float32."""
    n, c = logits.shape
    if logits.dtype not in (jnp.dtype(jnp.float32), jnp.dtype(jnp.bfloat16)):
        logits = logits.astype(jnp.float32)

    if tile_n is None:
        tile_n = _choose_tile_n(n, c, jnp.dtype(logits.dtype).itemsize)
    tile_n = max(8, (int(tile_n) // 8) * 8)

    num_tiles = pl.cdiv(n, tile_n)
    n_pad = num_tiles * tile_n

    target = target.astype(jnp.int32)
    if n_pad != n:
        logits = jnp.pad(logits, ((0, n_pad - n), (0, 0)))
        target = jnp.pad(target, (0, n_pad - n))
    target_col = target.reshape(n_pad, 1)

    picked = pl.pallas_call(
        functools.partial(_focal_loss_kernel, gamma=gamma, n_valid=n, tile_n=tile_n),
        out_shape=jax.ShapeDtypeStruct((n_pad, 1), jnp.float32),
        grid=(num_tiles,),
        in_specs=[
            pl.BlockSpec((tile_n, c), lambda i: (i, 0)),
            pl.BlockSpec((tile_n, 1), lambda i: (i, 0)),
        ],
        out_specs=pl.BlockSpec((tile_n, 1), lambda i: (i, 0)),
        compiler_params=pltpu.CompilerParams(
            dimension_semantics=("parallel",),
            vmem_limit_bytes=32 * 1024 * 1024,
        ),
    )(logits, target_col)

    # nll_loss(weight=None, reduction='mean') -> -mean over the N valid rows.
    return -jnp.sum(picked) / jnp.float32(n)


def _focal_loss_ref(logits, target, gamma=2):
    logits = logits.astype(jnp.float32)
    logpt = jax.nn.log_softmax(logits, axis=1)
    pt = jnp.exp(logpt)
    mod = (1.0 - pt) ** gamma * logpt
    picked = jnp.take_along_axis(
        mod, target.astype(jnp.int32).reshape(-1, 1), axis=1)[:, 0]
    return -jnp.mean(picked)


if __name__ == "__main__":
    key = jax.random.PRNGKey(0)
    k1, k2, k3, k4 = jax.random.split(key, 4)

    # Case 1: small f32 inputs matching the module's [N, C] contract.
    N, C = 8, 16
    logits = jax.random.normal(k1, (N, C), dtype=jnp.float32)
    target = jax.random.randint(k2, (N,), 0, C, dtype=jnp.int32)
    loss = jax.block_until_ready(focal_loss(logits, target, gamma=2))
    ref = _focal_loss_ref(logits, target, gamma=2)
    assert jnp.allclose(loss, ref, atol=1e-5, rtol=1e-5), (loss, ref)

    # Case 2: bf16 logits, multi-tile grid with a ragged (masked) last tile,
    # float gamma path.
    N2, C2 = 100, 10
    logits2 = jax.random.normal(k3, (N2, C2), dtype=jnp.bfloat16)
    target2 = jax.random.randint(k4, (N2,), 0, C2, dtype=jnp.int32)
    loss2 = jax.block_until_ready(focal_loss(logits2, target2, gamma=2.0, tile_n=16))
    ref2 = _focal_loss_ref(logits2, target2, gamma=2.0)
    assert jnp.allclose(loss2, ref2, atol=1e-4, rtol=1e-4), (loss2, ref2)

    print("KERNEL_OK")
</pallas_src>

<mosaic_0001>
module attributes {stable_mosaic.version = 11 : i64} {
  func.func @_focal_loss_kernel(%arg0: i32, %arg1: memref<8x16xf32, #tpu.memory_space<vmem>>, %arg2: memref<8x1xi32, #tpu.memory_space<vmem>>, %arg3: memref<8x1xf32, #tpu.memory_space<vmem>>) attributes {dimension_semantics = [#tpu.dimension_semantics<parallel>], iteration_bounds = array<i64: 1>, scalar_prefetch = 0 : i64, scratch_operands = 0 : i64, tpu.core_type = #tpu.core_type<tc>, window_params = [{transform_indices = @transform_0, window_bounds = array<i64: 8, 16>}, {transform_indices = @transform_1, window_bounds = array<i64: 8, 1>}, {transform_indices = @transform_2, window_bounds = array<i64: 8, 1>}]} {
    %c0 = arith.constant 0 : index
    %c0_0 = arith.constant 0 : index
    %0 = vector.load %arg1[%c0, %c0_0] : memref<8x16xf32, #tpu.memory_space<vmem>>, vector<8x16xf32>
    %c0_1 = arith.constant 0 : index
    %c0_2 = arith.constant 0 : index
    %1 = vector.load %arg2[%c0_1, %c0_2] : memref<8x1xi32, #tpu.memory_space<vmem>>, vector<8x1xi32>
    %cst = arith.constant dense<0xFF800000> : vector<8xf32>
    %2 = vector.multi_reduction <maximumf>, %0, %cst [1] : vector<8x16xf32> to vector<8xf32>
    %3 = vector.shape_cast %2 : vector<8xf32> to vector<8x1xf32>
    %4 = vector.broadcast %3 : vector<8x1xf32> to vector<8x16xf32>
    %5 = arith.subf %0, %4 : vector<8x16xf32>
    %6 = math.exp %5 : vector<8x16xf32>
    %cst_3 = arith.constant dense<0.000000e+00> : vector<8xf32>
    %7 = vector.multi_reduction <add>, %6, %cst_3 [1] : vector<8x16xf32> to vector<8xf32>
    %8 = vector.shape_cast %7 : vector<8xf32> to vector<8x1xf32>
    %9 = math.log %8 : vector<8x1xf32>
    %10 = tpu.iota {dimensions = array<i32: 1>} : vector<8x16xi32>
    %11 = vector.broadcast %1 : vector<8x1xi32> to vector<8x16xi32>
    %12 = arith.cmpi eq, %10, %11 : vector<8x16xi32>
    %cst_4 = arith.constant 0.000000e+00 : f32
    %13 = vector.broadcast %cst_4 : f32 to vector<8x16xf32>
    %14 = arith.select %12, %0, %13 : vector<8x16xi1>, vector<8x16xf32>
    %cst_5 = arith.constant dense<0.000000e+00> : vector<8xf32>
    %15 = vector.multi_reduction <add>, %14, %cst_5 [1] : vector<8x16xf32> to vector<8xf32>
    %16 = vector.shape_cast %15 : vector<8xf32> to vector<8x1xf32>
    %17 = arith.subf %16, %3 : vector<8x1xf32>
    %18 = arith.subf %17, %9 : vector<8x1xf32>
    %19 = math.exp %18 : vector<8x1xf32>
    %cst_6 = arith.constant 1.000000e+00 : f32
    %20 = vector.broadcast %cst_6 : f32 to vector<8x1xf32>
    %21 = arith.subf %20, %19 : vector<8x1xf32>
    %22 = arith.mulf %21, %21 : vector<8x1xf32>
    %23 = arith.mulf %22, %18 : vector<8x1xf32>
    %c8_i32 = arith.constant 8 : i32
    %24 = arith.muli %arg0, %c8_i32 : i32
    %25 = tpu.iota {dimensions = array<i32: 0>} : vector<8x1xi32>
    %26 = vector.broadcast %24 : i32 to vector<8x1xi32>
    %27 = arith.addi %26, %25 : vector<8x1xi32>
    %c8_i32_7 = arith.constant 8 : i32
    %28 = vector.broadcast %c8_i32_7 : i32 to vector<8x1xi32>
    %29 = arith.cmpi slt, %27, %28 : vector<8x1xi32>
    %cst_8 = arith.constant 0.000000e+00 : f32
    %30 = vector.broadcast %cst_8 : f32 to vector<8x1xf32>
    %31 = arith.select %29, %23, %30 : vector<8x1xi1>, vector<8x1xf32>
    %c0_9 = arith.constant 0 : index
    %c0_10 = arith.constant 0 : index
    %32 = vector.load %arg3[%c0_9, %c0_10] : memref<8x1xf32, #tpu.memory_space<vmem>>, vector<8x1xf32>
    tpu.vector_store %arg3[%c0_9, %c0_10], %31 {strides = array<i32>} : memref<8x1xf32, #tpu.memory_space<vmem>>, vector<8x1xf32>,
    return
  }
  func.func @transform_0(%arg0: i32) -> (i32, i32) {
    %c0_i32 = arith.constant 0 : i32
    %c0_i32_0 = arith.constant 0 : i32
    return %arg0, %c0_i32 : i32, i32
  }
  func.func @transform_1(%arg0: i32) -> (i32, i32) {
    %c0_i32 = arith.constant 0 : i32
    %c0_i32_0 = arith.constant 0 : i32
    return %arg0, %c0_i32 : i32, i32
  }
  func.func @transform_2(%arg0: i32) -> (i32, i32) {
    %c0_i32 = arith.constant 0 : i32
    %c0_i32_0 = arith.constant 0 : i32
    return %arg0, %c0_i32 : i32, i32
  }
}

</mosaic_0001>

<bundles_post_ra>
// kernel: tpu_custom_call.1
= control target key start
LH: loop header
LB: loop body
LE: loop exit
PB: predicated region body
PF: predicated region fallthrough
CT: control target
= control target key end

     0   :  { %vm13_vm0 = vcmask 130048   ;;  %v63_v1 = vmov 0   ;;  %v25_v7 = vlaneseq  ;;  %vm49_vm2 = vcmask 7168   ;;  %s91_s0 = inlined_call_operand.vmem [shape: f32[8,16], index: 0, kind: input, shape index: {}]   ;;  %s92_s1 = inlined_call_operand.vmem [shape: s32[8,1], index: 1, kind: input, shape index: {}]   ;;  %s93_s2 = inlined_call_operand.vmem [shape: f32[8,1], index: 2, kind: output, shape index: {}]  }
   0x1   :  { %v11_v0 = vld [vmem:[%s91_s0] sm:$0xff]  ;;  %56 = vset.pattern.permute.xlu0 %v63_v1 }
   0x2   :  { %v14_v2 = vsel %vm13_vm0, %v11_v0, -inf  ;;  %v12_v3 = vld [vmem:[%s92_s1] sm:$0xff]  ;;  %v26_v8 = vand.u32 127, %v25_v7 }
   0x3   :  { %15 = vmax.xlane.f32.xlu0 %v14_v2 }
  0x19   :  { %28 = vperm.xlu0 %56, %v12_v3  }
  0x90   :  { %v16_v4 = vpop.xlane.xlu0 %15 }
  0x91   :  { %v17_v5 = vsub.f32 %v11_v0, %v16_v4 }
  0x93   :  { %v18_v6 = vmul.f32 1.442695, %v17_v5 }
  0x95   :  { %57 = vpow2.f32 %v18_v6 }
  0x98   :  { %v29_v9 = vpop.permute.xlu0 %28 }
  0x99   :  { %vm30_vm1 = vcmp.eq.s32.totalorder %v26_v8, %v29_v9 }
  0x9a   :  { %v31_v11 = vsel %vm30_vm1, %v11_v0, 0.0 }
  0x9b   :  { %v32_v13 = vsel %vm13_vm0, %v31_v11, 0.0 }
  0x9f   :  { %v58_v10 = vpop.eup %57 }
  0xa0   :  { %v20_v12 = vsel %vm13_vm0, %v58_v10, 0.0 }
  0xa1   :  { %21 = vadd.xlane.f32.xlu1 %v20_v12 }
  0xa5   :  { %33 = vadd.xlane.f32.xlu1 %v32_v13 }
 0x12e   :  { %v22_v14 = vpop.xlane.xlu1 %21 }
 0x12f   :  { %59 = vlog2.f32 %v22_v14 }
 0x132   :  { %v34_v15 = vpop.xlane.xlu1 %33 }
 0x133   :  { %v35_v18 = vsub.f32 %v34_v15, %v16_v4 }
 0x139   :  { %v60_v16 = vpop.eup %59 }
 0x13a   :  { %v24_v17 = vmul.f32 0.6931472, %v60_v16 }
 0x13c   :  { %v36_v19 = vsub.f32 %v35_v18, %v24_v17 }
 0x13e   :  { %v37_v20 = vmul.f32 1.442695, %v36_v19 }
 0x140   :  { %61 = vpow2.f32 %v37_v20 }
 0x14a   :  { %v62_v21 = vpop.eup %61 }
 0x14b   :  { %v39_v22 = vsub.f32 1.0, %v62_v21 }
 0x14d   :  { %v40_v23 = vmul.f32 %v39_v22, %v39_v22 }
 0x14f   :  { %v41_v24 = vmul.f32 %v40_v23, %v36_v19 }
 0x151   :  { %50 = vst.msk [vmem:[%s93_s2] sm:$0xff] %vm49_vm2, %v41_v24 }

</bundles_post_ra>
